<compile_context>
chip_gen: v7x
topology: tpu7x:2x2x1
jax: 0.10.0
libtpu: 0.0.40
codegen_flags: <defaults>
</compile_context>

<pallas_src>
import jax
import jax.numpy as jnp
from jax.experimental import pallas as pl
from jax.experimental.pallas import tpu as pltpu


# ---------------------------------------------------------------------------
# Kernel: both NAM phases fused, one batch tile per grid step, batch on lanes.
# ---------------------------------------------------------------------------
def hierarch_nam_kernel(x_ref,
                        w1a_ref, b1a_ref, wo1_ref, bias1_ref,
                        w1b_ref, b1b_ref, wo2_ref, bias2_ref,
                        out_ref, concepts_ref, gams1_ref, gams2_ref):
    """Fused HierarchNAM forward for one batch tile (TB = batch tile on lanes).

    x_ref:        (F, TB)
    phase1:       w1a/b1a (F, U1, 1), wo1 (F, C1, U1), bias1 (C1, 1)
    phase2:       w1b/b1b (C1, U2, 1), wo2 (C1, C2, U2), bias2 (C2, 1)
    outputs:      out (C2, TB), concepts (C1, TB),
                  gams1 (F, C1, TB)   [-> (B, C1, F) in wrapper],
                  gams2 (C1, C2, TB)  [-> (B, C2, C1) in wrapper]
    """
    x = x_ref[...]                                                     # (F, TB)

    # ---- phase 1 (NAM_features) ----
    # First layer is Linear(1, U): a rank-1 op -> VPU broadcast FMA (no MXU,
    # no block-diagonal weights).
    h1 = jnp.maximum(x[:, None, :] * w1a_ref[...] + b1a_ref[...], 0.0)  # (F,U1,TB)
    # Per-feature output layer: batched (C1,U1)x(U1,TB) matmuls, N=TB lane-dense.
    g1 = jnp.einsum('fcu,fub->fcb', wo1_ref[...], h1,
                    preferred_element_type=jnp.float32)                 # (F,C1,TB)
    gams1_ref[...] = g1
    concepts = jnp.sum(g1, axis=0) + bias1_ref[...]                     # (C1, TB)
    concepts_ref[...] = concepts

    # ---- phase 2 (NAM_output) ----
    c = concepts.astype(w1b_ref.dtype)
    h2 = jnp.maximum(c[:, None, :] * w1b_ref[...] + b1b_ref[...], 0.0)  # (C1,U2,TB)
    g2 = jnp.einsum('cku,cub->ckb', wo2_ref[...], h2,
                    preferred_element_type=jnp.float32)                 # (C1,C2,TB)
    gams2_ref[...] = g2
    out_ref[...] = jnp.sum(g2, axis=0) + bias2_ref[...]                 # (C2, TB)


# ---------------------------------------------------------------------------
# Wrapper helpers
# ---------------------------------------------------------------------------
def _round_up(n, m):
    return -(-n // m) * m


def _const_spec(arr):
    """BlockSpec for a grid-invariant (replicated) weight, single-buffered."""
    nd = arr.ndim
    idx_map = lambda i, _nd=nd: (0,) * _nd
    try:
        # Constant index_map => double-buffering buys nothing; halve its VMEM.
        return pl.BlockSpec(arr.shape, idx_map, pipeline_mode=pl.Buffered(1))
    except TypeError:  # older JAX without pipeline_mode kwarg
        return pl.BlockSpec(arr.shape, idx_map)


def hierarch_nam_forward(x, phase1_params, phase2_params, *,
                         max_batch_tile=256, compute_dtype=jnp.float32):
    """HierarchNeuralAdditiveModel.forward (default path), single fused pallas_call.

    phase params: (w1 (F, U), b1 (F, U), wo (F, U, C), bias (1, C)).
    Returns (outputs (B, C2), concepts (B, C1),
             phase1_gams_out (B, C1, F), phase2_gams_out (B, C2, C1)).
    """
    B, F = x.shape
    w1a, b1a, wo1, bias1 = phase1_params
    w1b, b1b, wo2, bias2 = phase2_params
    U1, C1 = w1a.shape[1], wo1.shape[2]
    U2, C2 = w1b.shape[1], wo2.shape[2]
    assert w1b.shape[0] == C1, "phase2 feature count must equal latent_var_dim"

    cd = compute_dtype
    # Trace-time weight re-layouts (free; all tiny vs. activations).
    w1a_k = w1a.astype(cd).reshape(F, U1, 1)
    b1a_k = b1a.astype(cd).reshape(F, U1, 1)
    wo1_k = jnp.transpose(wo1, (0, 2, 1)).astype(cd)           # (F, C1, U1)
    bias1_k = bias1.reshape(C1, 1).astype(jnp.float32)
    w1b_k = w1b.astype(cd).reshape(C1, U2, 1)
    b1b_k = b1b.astype(cd).reshape(C1, U2, 1)
    wo2_k = jnp.transpose(wo2, (0, 2, 1)).astype(cd)           # (C1, C2, U2)
    bias2_k = bias2.reshape(C2, 1).astype(jnp.float32)
    weights = (w1a_k, b1a_k, wo1_k, bias1_k, w1b_k, b1b_k, wo2_k, bias2_k)

    # Batch tile: multiple of 128 (lane width), capped at 256; drop to 128 when
    # that yields >= 2 grid steps so v7x's two TensorCores both get work.
    bt = min(256, max(128, _round_up(min(max_batch_tile, max(B, 1)), 128)))
    if bt > 128 and _round_up(B, bt) // bt < 2:
        bt = 128
    B_pad = _round_up(B, bt)
    grid = (B_pad // bt,)

    # Transpose so batch is on the lane axis; pad batch (garbage rows sliced off).
    xT = jnp.transpose(x).astype(cd)                            # (F, B)
    if B_pad != B:
        xT = jnp.pad(xT, ((0, 0), (0, B_pad - B)))

    in_specs = [pl.BlockSpec((F, bt), lambda i: (0, i))]        # x: tiled over batch
    in_specs += [_const_spec(w) for w in weights]               # weights: replicated

    out_specs = (
        pl.BlockSpec((C2, bt), lambda i: (0, i)),               # outputs^T
        pl.BlockSpec((C1, bt), lambda i: (0, i)),               # concepts^T
        pl.BlockSpec((F, C1, bt), lambda i: (0, 0, i)),         # gams1 (f, c, b)
        pl.BlockSpec((C1, C2, bt), lambda i: (0, 0, i)),        # gams2 (c1, c2, b)
    )
    out_shape = (
        jax.ShapeDtypeStruct((C2, B_pad), jnp.float32),
        jax.ShapeDtypeStruct((C1, B_pad), jnp.float32),
        jax.ShapeDtypeStruct((F, C1, B_pad), jnp.float32),
        jax.ShapeDtypeStruct((C1, C2, B_pad), jnp.float32),
    )

    # Explicit VMEM budget (re-derived so it also holds on v7x's 64 MiB):
    # single-buffered weights + double-buffered x/outputs + live intermediates.
    isz = jnp.dtype(cd).itemsize
    w_bytes = sum(int(w.size) * w.dtype.itemsize for w in weights)
    x_bytes = 2 * F * bt * isz
    out_bytes = 2 * (C2 + C1 + F * C1 + C1 * C2) * bt * 4
    tmp_bytes = (F * U1 + F * C1 + C1 * U2 + C1 * C2 + 2 * C1 + C2) * bt * 4
    vmem_limit = int(min(64 * 2**20,
                         max(8 * 2**20,
                             2 * (w_bytes + x_bytes + out_bytes + tmp_bytes))))

    outT, cT, g1, g2 = pl.pallas_call(
        hierarch_nam_kernel,
        out_shape=out_shape,
        grid=grid,
        in_specs=in_specs,
        out_specs=out_specs,
        compiler_params=pltpu.CompilerParams(
            dimension_semantics=("parallel",),
            vmem_limit_bytes=vmem_limit),
    )(xT, *weights)

    # Un-transpose / permute in the wrapper (pure layout plumbing).
    outputs = jnp.transpose(outT[:, :B])                         # (B, C2)
    concepts = jnp.transpose(cT[:, :B])                          # (B, C1)
    phase1_gams_out = jnp.transpose(g1[:, :, :B], (2, 1, 0))     # (B, C1, F)
    phase2_gams_out = jnp.transpose(g2[:, :, :B], (2, 1, 0))     # (B, C2, C1)
    # task_type='regression' -> final_activation is None
    return outputs, concepts, phase1_gams_out, phase2_gams_out


# ---------------------------------------------------------------------------
# Parameter init + pure-JAX reference
# ---------------------------------------------------------------------------
def init_nam_params(key, num_features, num_units, num_classes):
    """Deterministic parameter init for one NAM phase (shallow FeatureNNs)."""
    k1, k2, k3 = jax.random.split(key, 3)
    # ReLULayer(1, U): Linear(1, U) weight (U,1) collapsed to (U,), plus bias (U,)
    w1 = jax.random.normal(k1, (num_features, num_units), jnp.float32) * 0.5
    b1 = jax.random.normal(k2, (num_features, num_units), jnp.float32) * 0.1
    # output layer: Linear(U, C, bias=False), xavier_uniform
    limit = (6.0 / (num_units + num_classes)) ** 0.5
    wo = jax.random.uniform(k3, (num_features, num_units, num_classes),
                            jnp.float32, minval=-limit, maxval=limit)
    bias = jnp.zeros((1, num_classes), jnp.float32)  # NAM additive bias (zeros)
    return w1, b1, wo, bias


def _nam_ref(x, params):
    """Pure-JAX reference for one NAM phase (per-feature math, no fusion)."""
    w1, b1, wo, bias = params
    h = jnp.maximum(x[:, :, None] * w1[None] + b1[None], 0.0)       # (B, F, U)
    g = jnp.einsum('bfu,fuc->bfc', h, wo)                           # (B, F, C)
    return g.sum(axis=1) + bias, jnp.transpose(g, (0, 2, 1))        # (B,C), (B,C,F)


# ---------------------------------------------------------------------------
# Demo / correctness check
# ---------------------------------------------------------------------------
if __name__ == "__main__":
    num_inputs = 6
    latent_var_dim = 2
    output_dim = 3
    num_units = 32

    key = jax.random.PRNGKey(0)
    kp1, kp2, kx1, kx2 = jax.random.split(key, 4)
    phase1_params = init_nam_params(kp1, num_inputs, num_units, latent_var_dim)
    phase2_params = init_nam_params(kp2, latent_var_dim, num_units, output_dim)

    # batch=16: single tile;  batch=200: exercises multi-tile grid + padding.
    for batch, kx in ((16, kx1), (200, kx2)):
        x = jax.random.normal(kx, (batch, num_inputs), jnp.float32)

        outputs, concepts, p1_gams, p2_gams = hierarch_nam_forward(
            x, phase1_params, phase2_params)
        jax.block_until_ready((outputs, concepts, p1_gams, p2_gams))

        # Shape checks (match PyTorch semantics)
        assert outputs.shape == (batch, output_dim)
        assert concepts.shape == (batch, latent_var_dim)
        assert p1_gams.shape == (batch, latent_var_dim, num_inputs)
        assert p2_gams.shape == (batch, output_dim, latent_var_dim)

        # Numerical check against pure-JAX reference
        c_ref, g1_ref = _nam_ref(x, phase1_params)
        o_ref, g2_ref = _nam_ref(c_ref, phase2_params)
        assert jnp.allclose(concepts, c_ref, atol=1e-3, rtol=1e-3)
        assert jnp.allclose(p1_gams, g1_ref, atol=1e-3, rtol=1e-3)
        assert jnp.allclose(outputs, o_ref, atol=1e-3, rtol=1e-3)
        assert jnp.allclose(p2_gams, g2_ref, atol=1e-3, rtol=1e-3)

    print("KERNEL_OK")
</pallas_src>

<mosaic_0001>
module attributes {stable_mosaic.version = 11 : i64} {
  func.func @hierarch_nam_kernel(%arg0: i32, %arg1: memref<6x128xf32, #tpu.memory_space<vmem>>, %arg2: memref<6x32x1xf32, #tpu.memory_space<vmem>>, %arg3: memref<6x32x1xf32, #tpu.memory_space<vmem>>, %arg4: memref<6x2x32xf32, #tpu.memory_space<vmem>>, %arg5: memref<2x1xf32, #tpu.memory_space<vmem>>, %arg6: memref<2x32x1xf32, #tpu.memory_space<vmem>>, %arg7: memref<2x32x1xf32, #tpu.memory_space<vmem>>, %arg8: memref<2x3x32xf32, #tpu.memory_space<vmem>>, %arg9: memref<3x1xf32, #tpu.memory_space<vmem>>, %arg10: memref<3x128xf32, #tpu.memory_space<vmem>>, %arg11: memref<2x128xf32, #tpu.memory_space<vmem>>, %arg12: memref<6x2x128xf32, #tpu.memory_space<vmem>>, %arg13: memref<2x3x128xf32, #tpu.memory_space<vmem>>) attributes {dimension_semantics = [#tpu.dimension_semantics<parallel>], iteration_bounds = array<i64: 1>, scalar_prefetch = 0 : i64, scratch_operands = 0 : i64, tpu.core_type = #tpu.core_type<tc>, window_params = [{transform_indices = @transform_0, window_bounds = array<i64: 6, 128>}, {pipeline_mode = #tpu.pipeline_mode<synchronous>, transform_indices = @transform_1, window_bounds = array<i64: 6, 32, 1>}, {pipeline_mode = #tpu.pipeline_mode<synchronous>, transform_indices = @transform_2, window_bounds = array<i64: 6, 32, 1>}, {pipeline_mode = #tpu.pipeline_mode<synchronous>, transform_indices = @transform_3, window_bounds = array<i64: 6, 2, 32>}, {pipeline_mode = #tpu.pipeline_mode<synchronous>, transform_indices = @transform_4, window_bounds = array<i64: 2, 1>}, {pipeline_mode = #tpu.pipeline_mode<synchronous>, transform_indices = @transform_5, window_bounds = array<i64: 2, 32, 1>}, {pipeline_mode = #tpu.pipeline_mode<synchronous>, transform_indices = @transform_6, window_bounds = array<i64: 2, 32, 1>}, {pipeline_mode = #tpu.pipeline_mode<synchronous>, transform_indices = @transform_7, window_bounds = array<i64: 2, 3, 32>}, {pipeline_mode = #tpu.pipeline_mode<synchronous>, transform_indices = @transform_8, window_bounds = array<i64: 3, 1>}, {transform_indices = @transform_9, window_bounds = array<i64: 3, 128>}, {transform_indices = @transform_10, window_bounds = array<i64: 2, 128>}, {transform_indices = @transform_11, window_bounds = array<i64: 6, 2, 128>}, {transform_indices = @transform_12, window_bounds = array<i64: 2, 3, 128>}]} {
    %c0 = arith.constant 0 : index
    %c0_0 = arith.constant 0 : index
    %0 = vector.load %arg1[%c0, %c0_0] : memref<6x128xf32, #tpu.memory_space<vmem>>, vector<6x128xf32>
    %1 = vector.shape_cast %0 : vector<6x128xf32> to vector<6x1x128xf32>
    %c0_1 = arith.constant 0 : index
    %c0_2 = arith.constant 0 : index
    %c0_3 = arith.constant 0 : index
    %2 = vector.load %arg2[%c0_1, %c0_2, %c0_3] : memref<6x32x1xf32, #tpu.memory_space<vmem>>, vector<6x32x1xf32>
    %3 = vector.broadcast %1 : vector<6x1x128xf32> to vector<6x32x128xf32>
    %4 = vector.broadcast %2 : vector<6x32x1xf32> to vector<6x32x128xf32>
    %5 = arith.mulf %3, %4 : vector<6x32x128xf32>
    %c0_4 = arith.constant 0 : index
    %c0_5 = arith.constant 0 : index
    %c0_6 = arith.constant 0 : index
    %6 = vector.load %arg3[%c0_4, %c0_5, %c0_6] : memref<6x32x1xf32, #tpu.memory_space<vmem>>, vector<6x32x1xf32>
    %7 = vector.broadcast %6 : vector<6x32x1xf32> to vector<6x32x128xf32>
    %8 = arith.addf %5, %7 : vector<6x32x128xf32>
    %cst = arith.constant 0.000000e+00 : f32
    %9 = vector.broadcast %cst : f32 to vector<6x32x128xf32>
    %10 = arith.maximumf %8, %9 : vector<6x32x128xf32>
    %c0_7 = arith.constant 0 : index
    %c0_8 = arith.constant 0 : index
    %c0_9 = arith.constant 0 : index
    %11 = vector.load %arg4[%c0_7, %c0_8, %c0_9] : memref<6x2x32xf32, #tpu.memory_space<vmem>>, vector<6x2x32xf32>
    "tpu.trace_start"() <{level = 10 : i32, message = "fcu,fub->fcb"}> : () -> ()
    %cst_10 = arith.constant dense<0.000000e+00> : vector<6x2x128xf32>
    %12 = tpu.matmul %11, %10, %cst_10 {dimension_numbers = #tpu.dot_dimension_numbers<[2], [1], [1], [2], [0, 0, 0, 1, 1, 2], [0], [0]>} : vector<6x2x32xf32>, vector<6x32x128xf32>, vector<6x2x128xf32> -> vector<6x2x128xf32>
    "tpu.trace_stop"() : () -> ()
    %c0_11 = arith.constant 0 : index
    %c0_12 = arith.constant 0 : index
    %c0_13 = arith.constant 0 : index
    %13 = vector.load %arg12[%c0_11, %c0_12, %c0_13] : memref<6x2x128xf32, #tpu.memory_space<vmem>>, vector<6x2x128xf32>
    tpu.vector_store %arg12[%c0_11, %c0_12, %c0_13], %12 {strides = array<i32>} : memref<6x2x128xf32, #tpu.memory_space<vmem>>, vector<6x2x128xf32>,
    %cst_14 = arith.constant dense<0.000000e+00> : vector<2x128xf32>
    %14 = vector.multi_reduction <add>, %12, %cst_14 [0] : vector<6x2x128xf32> to vector<2x128xf32>
    %c0_15 = arith.constant 0 : index
    %c0_16 = arith.constant 0 : index
    %15 = vector.load %arg5[%c0_15, %c0_16] : memref<2x1xf32, #tpu.memory_space<vmem>>, vector<2x1xf32>
    %16 = vector.broadcast %15 : vector<2x1xf32> to vector<2x128xf32>
    %17 = arith.addf %14, %16 : vector<2x128xf32>
    %c0_17 = arith.constant 0 : index
    %c0_18 = arith.constant 0 : index
    %18 = vector.load %arg11[%c0_17, %c0_18] : memref<2x128xf32, #tpu.memory_space<vmem>>, vector<2x128xf32>
    tpu.vector_store %arg11[%c0_17, %c0_18], %17 {strides = array<i32>} : memref<2x128xf32, #tpu.memory_space<vmem>>, vector<2x128xf32>,
    %19 = vector.shape_cast %17 : vector<2x128xf32> to vector<2x1x128xf32>
    %c0_19 = arith.constant 0 : index
    %c0_20 = arith.constant 0 : index
    %c0_21 = arith.constant 0 : index
    %20 = vector.load %arg6[%c0_19, %c0_20, %c0_21] : memref<2x32x1xf32, #tpu.memory_space<vmem>>, vector<2x32x1xf32>
    %21 = vector.broadcast %19 : vector<2x1x128xf32> to vector<2x32x128xf32>
    %22 = vector.broadcast %20 : vector<2x32x1xf32> to vector<2x32x128xf32>
    %23 = arith.mulf %21, %22 : vector<2x32x128xf32>
    %c0_22 = arith.constant 0 : index
    %c0_23 = arith.constant 0 : index
    %c0_24 = arith.constant 0 : index
    %24 = vector.load %arg7[%c0_22, %c0_23, %c0_24] : memref<2x32x1xf32, #tpu.memory_space<vmem>>, vector<2x32x1xf32>
    %25 = vector.broadcast %24 : vector<2x32x1xf32> to vector<2x32x128xf32>
    %26 = arith.addf %23, %25 : vector<2x32x128xf32>
    %cst_25 = arith.constant 0.000000e+00 : f32
    %27 = vector.broadcast %cst_25 : f32 to vector<2x32x128xf32>
    %28 = arith.maximumf %26, %27 : vector<2x32x128xf32>
    %c0_26 = arith.constant 0 : index
    %c0_27 = arith.constant 0 : index
    %c0_28 = arith.constant 0 : index
    %29 = vector.load %arg8[%c0_26, %c0_27, %c0_28] : memref<2x3x32xf32, #tpu.memory_space<vmem>>, vector<2x3x32xf32>
    "tpu.trace_start"() <{level = 10 : i32, message = "cku,cub->ckb"}> : () -> ()
    %cst_29 = arith.constant dense<0.000000e+00> : vector<2x3x128xf32>
    %30 = tpu.matmul %29, %28, %cst_29 {dimension_numbers = #tpu.dot_dimension_numbers<[2], [1], [1], [2], [0, 0, 0, 1, 1, 2], [0], [0]>} : vector<2x3x32xf32>, vector<2x32x128xf32>, vector<2x3x128xf32> -> vector<2x3x128xf32>
    "tpu.trace_stop"() : () -> ()
    %c0_30 = arith.constant 0 : index
    %c0_31 = arith.constant 0 : index
    %c0_32 = arith.constant 0 : index
    %31 = vector.load %arg13[%c0_30, %c0_31, %c0_32] : memref<2x3x128xf32, #tpu.memory_space<vmem>>, vector<2x3x128xf32>
    tpu.vector_store %arg13[%c0_30, %c0_31, %c0_32], %30 {strides = array<i32>} : memref<2x3x128xf32, #tpu.memory_space<vmem>>, vector<2x3x128xf32>,
    %cst_33 = arith.constant dense<0.000000e+00> : vector<3x128xf32>
    %32 = vector.multi_reduction <add>, %30, %cst_33 [0] : vector<2x3x128xf32> to vector<3x128xf32>
    %c0_34 = arith.constant 0 : index
    %c0_35 = arith.constant 0 : index
    %33 = vector.load %arg9[%c0_34, %c0_35] : memref<3x1xf32, #tpu.memory_space<vmem>>, vector<3x1xf32>
    %34 = vector.broadcast %33 : vector<3x1xf32> to vector<3x128xf32>
    %35 = arith.addf %32, %34 : vector<3x128xf32>
    %c0_36 = arith.constant 0 : index
    %c0_37 = arith.constant 0 : index
    %36 = vector.load %arg10[%c0_36, %c0_37] : memref<3x128xf32, #tpu.memory_space<vmem>>, vector<3x128xf32>
    tpu.vector_store %arg10[%c0_36, %c0_37], %35 {strides = array<i32>} : memref<3x128xf32, #tpu.memory_space<vmem>>, vector<3x128xf32>,
    return
  }
  func.func @transform_0(%arg0: i32) -> (i32, i32) {
    %c0_i32 = arith.constant 0 : i32
    %c0_i32_0 = arith.constant 0 : i32
    return %c0_i32, %arg0 : i32, i32
  }
  func.func @transform_1(%arg0: i32) -> (i32, i32, i32) {
    %c0_i32 = arith.constant 0 : i32
    %c0_i32_0 = arith.constant 0 : i32
    %c0_i32_1 = arith.constant 0 : i32
    %c0_i32_2 = arith.constant 0 : i32
    return %c0_i32, %c0_i32_0, %c0_i32_1 : i32, i32, i32
  }
  func.func @transform_2(%arg0: i32) -> (i32, i32, i32) {
    %c0_i32 = arith.constant 0 : i32
    %c0_i32_0 = arith.constant 0 : i32
    %c0_i32_1 = arith.constant 0 : i32
    %c0_i32_2 = arith.constant 0 : i32
    return %c0_i32, %c0_i32_0, %c0_i32_1 : i32, i32, i32
  }
  func.func @transform_3(%arg0: i32) -> (i32, i32, i32) {
    %c0_i32 = arith.constant 0 : i32
    %c0_i32_0 = arith.constant 0 : i32
    %c0_i32_1 = arith.constant 0 : i32
    %c0_i32_2 = arith.constant 0 : i32
    return %c0_i32, %c0_i32_0, %c0_i32_1 : i32, i32, i32
  }
  func.func @transform_4(%arg0: i32) -> (i32, i32) {
    %c0_i32 = arith.constant 0 : i32
    %c0_i32_0 = arith.constant 0 : i32
    %c0_i32_1 = arith.constant 0 : i32
    return %c0_i32, %c0_i32_0 : i32, i32
  }
  func.func @transform_5(%arg0: i32) -> (i32, i32, i32) {
    %c0_i32 = arith.constant 0 : i32
    %c0_i32_0 = arith.constant 0 : i32
    %c0_i32_1 = arith.constant 0 : i32
    %c0_i32_2 = arith.constant 0 : i32
    return %c0_i32, %c0_i32_0, %c0_i32_1 : i32, i32, i32
  }
  func.func @transform_6(%arg0: i32) -> (i32, i32, i32) {
    %c0_i32 = arith.constant 0 : i32
    %c0_i32_0 = arith.constant 0 : i32
    %c0_i32_1 = arith.constant 0 : i32
    %c0_i32_2 = arith.constant 0 : i32
    return %c0_i32, %c0_i32_0, %c0_i32_1 : i32, i32, i32
  }
  func.func @transform_7(%arg0: i32) -> (i32, i32, i32) {
    %c0_i32 = arith.constant 0 : i32
    %c0_i32_0 = arith.constant 0 : i32
    %c0_i32_1 = arith.constant 0 : i32
    %c0_i32_2 = arith.constant 0 : i32
    return %c0_i32, %c0_i32_0, %c0_i32_1 : i32, i32, i32
  }
  func.func @transform_8(%arg0: i32) -> (i32, i32) {
    %c0_i32 = arith.constant 0 : i32
    %c0_i32_0 = arith.constant 0 : i32
    %c0_i32_1 = arith.constant 0 : i32
    return %c0_i32, %c0_i32_0 : i32, i32
  }
  func.func @transform_9(%arg0: i32) -> (i32, i32) {
    %c0_i32 = arith.constant 0 : i32
    %c0_i32_0 = arith.constant 0 : i32
    return %c0_i32, %arg0 : i32, i32
  }
  func.func @transform_10(%arg0: i32) -> (i32, i32) {
    %c0_i32 = arith.constant 0 : i32
    %c0_i32_0 = arith.constant 0 : i32
    return %c0_i32, %arg0 : i32, i32
  }
  func.func @transform_11(%arg0: i32) -> (i32, i32, i32) {
    %c0_i32 = arith.constant 0 : i32
    %c0_i32_0 = arith.constant 0 : i32
    %c0_i32_1 = arith.constant 0 : i32
    return %c0_i32, %c0_i32_0, %arg0 : i32, i32, i32
  }
  func.func @transform_12(%arg0: i32) -> (i32, i32, i32) {
    %c0_i32 = arith.constant 0 : i32
    %c0_i32_0 = arith.constant 0 : i32
    %c0_i32_1 = arith.constant 0 : i32
    return %c0_i32, %c0_i32_0, %arg0 : i32, i32, i32
  }
}

</mosaic_0001>

<bundles_post_ra>
// kernel: tpu_custom_call.1
= control target key start
LH: loop header
LB: loop body
LE: loop exit
PB: predicated region body
PF: predicated region fallthrough
CT: control target
= control target key end

     0   :  { %18 = vsyncpa [#allocation3], 0  ;;  %v1577_v2 = vmov 0   ;;  %v1578_v11 = vmov 0.0|0.0   ;;  %s1996_s0 = inlined_call_operand.vmem [shape: f32[6,128], index: 0, kind: input, shape index: {}]   ;;  %s1997_s1 = inlined_call_operand.vmem [shape: f32[6,32,1], index: 1, kind: input, shape index: {}]   ;;  %s1998_s2 = inlined_call_operand.vmem [shape: f32[6,32,1], index: 2, kind: input, shape index: {}]   ;;  %s1999_s3 = inlined_call_operand.vmem [shape: f32[6,2,32], index: 3, kind: input, shape index: {}]   ;;  %s2000_s4 = inlined_call_operand.vmem [shape: f32[2,1], index: 4, kind: input, shape index: {}]   ;;  %s2001_s5 = inlined_call_operand.vmem [shape: f32[2,32,1], index: 5, kind: input, shape index: {}]   ;;  %s2002_s6 = inlined_call_operand.vmem [shape: f32[2,32,1], index: 6, kind: input, shape index: {}]   ;;  %s2003_s7 = inlined_call_operand.vmem [shape: f32[2,3,32], index: 7, kind: input, shape index: {}]   ;;  %s2004_s8 = inlined_call_operand.vmem [shape: f32[3,1], index: 8, kind: input, shape index: {}]   ;;  %s2005_s9 = inlined_call_operand.hbm [shape: f32[3,128], index: 9, kind: output, shape index: {0}]   ;;  %s2006_s10 = inlined_call_operand.hbm [shape: f32[2,128], index: 10, kind: output, shape index: {1}]   ;;  %s2007_s11 = inlined_call_operand.hbm [shape: f32[6,2,128], index: 11, kind: output, shape index: {2}]   ;;  %s2008_s12 = inlined_call_operand.vmem [shape: f32[2,3,128], index: 12, kind: output, shape index: {3}]  }
   0x1   :  { %v91_v0 = vld [vmem:[%s1997_s1 + $0x20] sm:$0xff]  ;;  %1505 = vset.pattern.permute.xlu1 %v1577_v2  ;;  %1504 = vset.pattern.permute.xlu0 %v1577_v2  ;;  %v92_v3 = vld [vmem:[%s1997_s1 + $0x28] sm:$0xff]  ;;  %v90_v7 = vld [vmem:[%s1997_s1 + $0x18] sm:$0xff] }
   0x2   :  { %v87_v1 = vld [vmem:[%s1997_s1] sm:$0xff]  ;;  %163 = vperm.xlu1 %1505, %v91_v0   ;;  %v88_v4 = vld [vmem:[%s1997_s1 + $0x8] sm:$0xff]  ;;  %v89_v8 = vld [vmem:[%s1997_s1 + $0x10] sm:$0xff]  ;;  %1446 = vmatprep.subr.bf16.mxu0 %v1578_v11 }
   0x3   :  { %143 = vperm.xlu0 %1504, %v87_v1   ;;  %v286_v5 = vld [vmem:[%s1998_s2 + $0x8] sm:$0xff]  ;;  %v285_v6 = vld [vmem:[%s1998_s2] sm:$0xff]  ;;  %1452 = vmatprep.subr.bf16.mxu1 %v1578_v11  ;;  %v94_v12 = vld [vmem:[%s1997_s1 + $0x38] sm:$0xff] }
   0x4   :  { %v290_v9 = vld [vmem:[%s1998_s2 + $0x28] sm:$0xff]  ;;  %v289_v10 = vld [vmem:[%s1998_s2 + $0x20] sm:$0xff]  ;;  %v93_v13 = vld [vmem:[%s1997_s1 + $0x30] sm:$0xff] }
   0x6   :  { %168 = vperm.xlu1 %1505, %v92_v3  }
   0x7   :  { %148 = vperm.xlu0 %1504, %v88_v4  }
   0xa   :  { %316 = vperm.xlu1 %1505, %v286_v5  }
   0xb   :  { %311 = vperm.xlu0 %1504, %v285_v6  }
   0xe   :  { %158 = vperm.xlu1 %1505, %v90_v7  }
   0xf   :  { %153 = vperm.xlu0 %1504, %v89_v8  }
  0x12   :  { %336 = vperm.xlu1 %1505, %v290_v9  }
  0x13   :  { %331 = vperm.xlu0 %1504, %v289_v10  }
  0x16   :  { %178 = vperm.xlu1 %1505, %v94_v12  }
  0x17   :  { %173 = vperm.xlu0 %1504, %v93_v13  }
  0x18   :  { %19 = vsyncpa [#allocation5], 0  ;;  %v288_v14 = vld [vmem:[%s1998_s2 + $0x18] sm:$0xff]  ;;  %v287_v15 = vld [vmem:[%s1998_s2 + $0x10] sm:$0xff]  ;;  %vm1579_vm0 = vmmov 0   ;;  %v1580_v28 = vmov 0.0   ;;  %v44_v63 = vlaneseq }
  0x19   :  { %v96_v16 = vld [vmem:[%s1997_s1 + $0x48] sm:$0xff]  ;;  %v95_v17 = vld [vmem:[%s1997_s1 + $0x40] sm:$0xff]  ;;  %v292_v18 = vld [vmem:[%s1998_s2 + $0x38] sm:$0xff]  ;;  %1366 = vmatprep.mubr.msk.f32.mxu0 %vm1579_vm0, %v1580_v28  ;;  %1377 = vmatprep.mubr.msk.f32.mxu1 %vm1579_vm0, %v1580_v28  ;;  %v1581_v61 = vmov 1966171168   ;;  %vm483_vm1 = vcmask 261120  }
  0x1a   :  { %326 = vperm.xlu1 %1505, %v288_v14   ;;  %v291_v19 = vld [vmem:[%s1998_s2 + $0x30] sm:$0xff]  ;;  %v100_v20 = vld [vmem:[%s1997_s1 + $0x68] sm:$0xff]  ;;  %v99_v21 = vld [vmem:[%s1997_s1 + $0x60] sm:$0xff]  ;;  %v42_v62 = vunpack.c.l.s4 %v1581_v61  ;;  %v45_v3 = vshrl.u32 %v44_v63, 7  ;;  %vm928_vm2 = vcmask 1041408   ;;  %s1582_s15 = smov [#allocation4]  }
  0x1b   :  { %321 = vperm.xlu0 %1504, %v287_v15   ;;  %v294_v22 = vld [vmem:[%s1998_s2 + $0x48] sm:$0xff]  ;;  %v293_v23 = vld [vmem:[%s1998_s2 + $0x40] sm:$0xff]  ;;  %v98_v24 = vld [vmem:[%s1997_s1 + $0x58] sm:$0xff] }
  0x1c   :  { %v97_v25 = vld [vmem:[%s1997_s1 + $0x50] sm:$0xff]  ;;  %v298_v26 = vld [vmem:[%s1998_s2 + $0x68] sm:$0xff]  ;;  %v297_v27 = vld [vmem:[%s1998_s2 + $0x60] sm:$0xff]  ;;  %v43_v2 = vunpack.c.0.s8 %v42_v62  ;;  %v1865_v14 = vsub.s32 0, %v45_v3 }
  0x1d   :  { %v102_v29 = vld [vmem:[%s1997_s1 + $0x78] sm:$0xff]  ;;  %v101_v30 = vld [vmem:[%s1997_s1 + $0x70] sm:$0xff]  ;;  %v104_v33 = vld [vmem:[%s1997_s1 + $0x88] sm:$0xff] }
  0x1e   :  { %188 = vperm.xlu1 %1505, %v96_v16   ;;  %v296_v31 = vld [vmem:[%s1998_s2 + $0x58] sm:$0xff]  ;;  %v295_v32 = vld [vmem:[%s1998_s2 + $0x50] sm:$0xff]  ;;  %v103_v34 = vld [vmem:[%s1997_s1 + $0x80] sm:$0xff]  ;;  %v1844_v6 = vsub.s32 %v43_v2, %v45_v3 }
  0x1f   :  { %183 = vperm.xlu0 %1504, %v95_v17   ;;  %v300_v35 = vld [vmem:[%s1998_s2 + $0x78] sm:$0xff]  ;;  %v299_v36 = vld [vmem:[%s1998_s2 + $0x70] sm:$0xff]  ;;  %v108_v37 = vld [vmem:[%s1997_s1 + $0xa8] sm:$0xff] }
  0x20   :  { %v107_v38 = vld [vmem:[%s1997_s1 + $0xa0] sm:$0xff]  ;;  %v302_v39 = vld [vmem:[%s1998_s2 + $0x88] sm:$0xff]  ;;  %v106_v41 = vld [vmem:[%s1997_s1 + $0x98] sm:$0xff] }
  0x21   :  { %v301_v40 = vld [vmem:[%s1998_s2 + $0x80] sm:$0xff]  ;;  %v105_v42 = vld [vmem:[%s1997_s1 + $0x90] sm:$0xff]  ;;  %v306_v43 = vld [vmem:[%s1998_s2 + $0xa8] sm:$0xff] }
  0x22   :  { %346 = vperm.xlu1 %1505, %v292_v18   ;;  %v305_v44 = vld [vmem:[%s1998_s2 + $0xa0] sm:$0xff]  ;;  %v110_v45 = vld [vmem:[%s1997_s1 + $0xb8] sm:$0xff]  ;;  %v109_v46 = vld [vmem:[%s1997_s1 + $0xb0] sm:$0xff] }
  0x23   :  { %341 = vperm.xlu0 %1504, %v291_v19   ;;  %v304_v47 = vld [vmem:[%s1998_s2 + $0x98] sm:$0xff]  ;;  %v303_v48 = vld [vmem:[%s1998_s2 + $0x90] sm:$0xff]  ;;  %v971_v51 = vld [vmem:[%s2001_s5] sm:$0xff] }
  0x24   :  { %v308_v49 = vld [vmem:[%s1998_s2 + $0xb8] sm:$0xff]  ;;  %v307_v50 = vld [vmem:[%s1998_s2 + $0xb0] sm:$0xff]  ;;  %v940_v52 = vld [vmem:[%s2000_s4] sm:$0x3]  ;;  %s1279_s2 = sshll.u32 %s1582_s15, 4  ;;  %s1280_s2 = int_to_ptr.vmem [resolvable:$true] %s1279_s2 }
  0x25   :  { %v975_v53 = vld [vmem:[%s2001_s5 + $0x20] sm:$0xff]  ;;  %v972_v54 = vld [vmem:[%s2001_s5 + $0x8] sm:$0xff]  ;;  %v973_v59 = vld [vmem:[%s2001_s5 + $0x10] sm:$0xff]  ;;  %s1507_s16 = scalar_lea.vmem %s1280_s2, 32  ;;  %p1512_p1 = scmp.lt.s32.totalorder %s1280_s2, %s1280_s2 }
  0x26   :  { %208 = vperm.xlu1 %1505, %v100_v20   ;;  %v1037_v55 = vld [vmem:[%s2002_s6] sm:$0xff]  ;;  %v976_v56 = vld [vmem:[%s2001_s5 + $0x28] sm:$0xff]  ;;  %v977_v0 = vld [vmem:[%s2001_s5 + $0x30] sm:$0xff]  ;;  %p1508_p0 = scmp.ne.s32.totalorder %s1280_s2, %s1507_s16  ;;  %p1513_p2 = scmp.lt.s32.totalorder %s1507_s16, %s1507_s16 }
  0x27   :  { %203 = vperm.xlu0 %1504, %v99_v21   ;;  %v1041_v57 = vld [vmem:[%s2002_s6 + $0x20] sm:$0xff]  ;;  %v1038_v58 = vld [vmem:[%s2002_s6 + $0x8] sm:$0xff]  ;;  %v974_v1 = vld [vmem:[%s2001_s5 + $0x18] sm:$0xff] }
  0x28   :  { %v1042_v60 = vld [vmem:[%s2002_s6 + $0x28] sm:$0xff]  ;;  %v1039_v4 = vld [vmem:[%s2002_s6 + $0x10] sm:$0xff]  ;;  %v978_v5 = vld [vmem:[%s2001_s5 + $0x38] sm:$0xff]  ;;  %p1514_p3 = por %p1513_p2, %p1512_p1 }
  0x29   :  { %v1043_v7 = vld [vmem:[%s2002_s6 + $0x30] sm:$0xff]  ;;  %v1040_v8 = vld [vmem:[%s2002_s6 + $0x18] sm:$0xff]  ;;  %v1855_v9 = vld [vmem:[%s1996_s0] sm:$0x3f] }
  0x2a   :  { %356 = vperm.xlu1 %1505, %v294_v22   ;;  %v47_v10 = vrot.slane %v1855_v9, %v1844_v6  ;;  %v1255_v12 = vld [vmem:[%s2004_s8] sm:$0x7]  ;;  %v1044_v13 = vld [vmem:[%s2002_s6 + $0x38] sm:$0xff]  ;;  %p1515_p4 = pnand %p1514_p3, %p1508_p0 }
  0x2b   :  { %351 = vperm.xlu0 %1504, %v293_v23   ;;  %v477_v61 = vld [vmem:[%s1999_s3] sm:$0x3] }
  0x2c   :  { %v63_v15 = vrot.slane %v47_v10, %v1844_v6  ;;  %v55_v18 = vcombine.high %v47_v10, %v47_v10 }
  0x2e   :  { %198 = vperm.xlu1 %1505, %v98_v24   ;;  %v114_v19 = vrot.slane %v63_v15, %v1865_v14  ;;  %v1870_v22 = vrot.slane %v55_v18, %v1844_v6 }
  0x2f   :  { %193 = vperm.xlu0 %1504, %v97_v25  }
  0x32   :  { %376 = vperm.xlu1 %1505, %v298_v26  }
  0x33   :  { %371 = vperm.xlu0 %1504, %v297_v27  }
  0x36   :  { %218 = vperm.xlu1 %1505, %v102_v29  }
  0x37   :  { %213 = vperm.xlu0 %1504, %v101_v30   ;;  %v118_v30 = vrot.slane %v1870_v22, %v1865_v14 }
  0x3a   :  { %366 = vperm.xlu1 %1505, %v296_v31  }
  0x3b   :  { %361 = vperm.xlu0 %1504, %v295_v32  }
  0x3e   :  { %228 = vperm.xlu1 %1505, %v104_v33  }
  0x3f   :  { %223 = vperm.xlu0 %1504, %v103_v34  }
  0x42   :  { %386 = vperm.xlu1 %1505, %v300_v35  }
  0x43   :  { %381 = vperm.xlu0 %1504, %v299_v36  }
  0x46   :  { %248 = vperm.xlu1 %1505, %v108_v37  }
  0x47   :  { %243 = vperm.xlu0 %1504, %v107_v38  }
  0x4a   :  { %396 = vperm.xlu1 %1505, %v302_v39  }
  0x4b   :  { %391 = vperm.xlu0 %1504, %v301_v40  }
  0x4e   :  { %238 = vperm.xlu1 %1505, %v106_v41  }
  0x4f   :  { %233 = vperm.xlu0 %1504, %v105_v42  }
  0x52   :  { %416 = vperm.xlu1 %1505, %v306_v43  }
  0x53   :  { %411 = vperm.xlu0 %1504, %v305_v44  }
  0x56   :  { %258 = vperm.xlu1 %1505, %v110_v45  }
  0x57   :  { %253 = vperm.xlu0 %1504, %v109_v46  }
  0x5a   :  { %406 = vperm.xlu1 %1505, %v304_v47  }
  0x5b   :  { %401 = vperm.xlu0 %1504, %v303_v48  }
  0x5e   :  { %426 = vperm.xlu1 %1505, %v308_v49  }
  0x5f   :  { %421 = vperm.xlu0 %1504, %v307_v50  }
  0x62   :  { %991 = vperm.xlu1 %1505, %v971_v51  }
  0x63   :  { %943 = vperm.xlu0 %1504, %v940_v52  }
  0x66   :  { %1011 = vperm.xlu1 %1505, %v975_v53  }
  0x67   :  { %996 = vperm.xlu0 %1504, %v972_v54  }
  0x6a   :  { %1047 = vperm.xlu1 %1505, %v1037_v55  }
  0x6b   :  { %1016 = vperm.xlu0 %1504, %v976_v56  }
  0x6e   :  { %1067 = vperm.xlu1 %1505, %v1041_v57  }
  0x6f   :  { %1052 = vperm.xlu0 %1504, %v1038_v58  }
  0x72   :  { %1001 = vperm.xlu1 %1505, %v973_v59  }
  0x73   :  { %1072 = vperm.xlu0 %1504, %v1042_v60   ;;  %v85_v60 = vcombine.high %v63_v15, %v63_v15  ;;  %v478_v15 = vld [vmem:[%s1999_s3 + $0x2] sm:$0x3] }
  0x75   :  { %v122_v2 = vrot.slane %v85_v60, %v1865_v14 }
  0x76   :  { %1021 = vperm.xlu1 %1505, %v977_v0  }
  0x77   :  { %1006 = vperm.xlu0 %1504, %v974_v1  }
  0x7a   :  { %1057 = vperm.xlu1 %1505, %v1039_v4  }
  0x7b   :  { %1026 = vperm.xlu0 %1504, %v978_v5  }
  0x7e   :  { %1077 = vperm.xlu1 %1505, %v1043_v7  }
  0x7f   :  { %1062 = vperm.xlu0 %1504, %v1040_v8  }
  0x81   :  { %v164_v16 = vpop.permute.xlu1 %163 }
  0x82   :  { %v144_v17 = vpop.permute.xlu0 %143  ;;  %1258 = vperm.xlu1 %1505, %v1255_v12   ;;  %v265_v36 = vmul.f32 %v164_v16, %v118_v30 }
  0x83   :  { %1082 = vperm.xlu0 %1504, %v1044_v13   ;;  %v261_v23 = vmul.f32 %v144_v17, %v114_v19  ;;  %v86_v13 = vcombine.high %v1870_v22, %v1870_v22 }
  0x85   :  { %v169_v20 = vpop.permute.xlu1 %168 }
  0x86   :  { %v149_v21 = vpop.permute.xlu0 %148  ;;  %v266_v37 = vmul.f32 %v169_v20, %v118_v30  ;;  %v126_v20 = vrot.slane %v86_v13, %v1865_v14 }
  0x87   :  { %v262_v24 = vmul.f32 %v149_v21, %v114_v19 }
  0x89   :  { %v317_v25 = vpop.permute.xlu1 %316 }
  0x8a   :  { %v312_v26 = vpop.permute.xlu0 %311  ;;  %v430_v27 = vadd.f32 %v317_v25, %v262_v24 }
  0x8b   :  { %v429_v29 = vadd.f32 %v312_v26, %v261_v23 }
  0x8c   :  { %v454_v31 = vmax.f32 %v430_v27, 0.0 }
  0x8d   :  { %v453_v32 = vmax.f32 %v429_v29, 0.0  ;;  %v159_v33 = vpop.permute.xlu1 %158 }
  0x8e   :  { %v154_v34 = vpop.permute.xlu0 %153  ;;  %v264_v47 = vmul.f32 %v159_v33, %v114_v19 }
  0x8f   :  { %v1447_v35 = vpack.c.bf16 %v454_v31, %v453_v32  ;;  %v263_v48 = vmul.f32 %v154_v34, %v114_v19 }
  0x91   :  { %1448 = vmatpush3.bf16.msra.mxu0 %v1447_v35  ;;  %v337_v38 = vpop.permute.xlu1 %336 }
  0x92   :  { %v332_v39 = vpop.permute.xlu0 %331  ;;  %1449 = vmatprep.subr.bf16.mxu0 %v1578_v11  ;;  %v434_v40 = vadd.f32 %v337_v38, %v266_v37 }
  0x93   :  { %v433_v41 = vadd.f32 %v332_v39, %v265_v36 }
  0x94   :  { %v458_v42 = vmax.f32 %v434_v40, 0.0  ;;  %v40_v40 = vcombine.high %v1855_v9, %v1855_v9  ;;  %v479_v9 = vld [vmem:[%s1999_s3 + $0x4] sm:$0x3] }
  0x95   :  { %v457_v43 = vmax.f32 %v433_v41, 0.0  ;;  %v179_v44 = vpop.permute.xlu1 %178 }
  0x96   :  { %v174_v45 = vpop.permute.xlu0 %173  ;;  %v268_v58 = vmul.f32 %v179_v44, %v118_v30 }
  0x97   :  { %v1453_v46 = vpack.c.bf16 %v458_v42, %v457_v43  ;;  %v267_v59 = vmul.f32 %v174_v45, %v118_v30 }
  0x99   :  { %1454 = vmatpush3.bf16.msra.mxu1 %v1453_v46  ;;  %v327_v49 = vpop.permute.xlu1 %326 }
  0x9a   :  { %v322_v50 = vpop.permute.xlu0 %321  ;;  %1455 = vmatprep.subr.bf16.mxu1 %v1578_v11  ;;  %v432_v51 = vadd.f32 %v327_v49, %v264_v47  ;;  %v54_v47 = vrot.slane %v40_v40, %v1844_v6 }
  0x9b   :  { %v431_v52 = vadd.f32 %v322_v50, %v263_v48 }
  0x9c   :  { %v456_v53 = vmax.f32 %v432_v51, 0.0 }
  0x9d   :  { %v455_v54 = vmax.f32 %v431_v52, 0.0  ;;  %v189_v55 = vpop.permute.xlu1 %188 }
  0x9e   :  { %v184_v56 = vpop.permute.xlu0 %183  ;;  %v270_v10 = vmul.f32 %v189_v55, %v122_v2 }
  0x9f   :  { %v1450_v57 = vpack.c.bf16 %v456_v53, %v455_v54  ;;  %v269_v12 = vmul.f32 %v184_v56, %v122_v2  ;;  %v70_v53 = vrot.slane %v54_v47, %v1844_v6 }
  0xa1   :  { %1451 = vmatpush3.bf16.msra.mxu0 %v1450_v57  ;;  %v347_v62 = vpop.permute.xlu1 %346 }
  0xa2   :  { %v342_v63 = vpop.permute.xlu0 %341  ;;  %1458 = vmatprep.subr.bf16.mxu0 %v1578_v11  ;;  %v436_v0 = vadd.f32 %v347_v62, %v268_v58  ;;  %v130_v58 = vrot.slane %v70_v53, %v1865_v14 }
  0xa3   :  { %v435_v1 = vadd.f32 %v342_v63, %v267_v59 }
  0xa4   :  { %1367 = vmatmul.mubr.msk.f32.vlgmr.msra.gmra.mrb[0].mxu0 %vm483_vm1, %v477_v61  ;;  %v460_v3 = vmax.f32 %v436_v0, 0.0  ;;  %v56_v61 = vcombine.high %v54_v47, %v54_v47 }
  0xa5   :  { %v459_v4 = vmax.f32 %v435_v1, 0.0  ;;  %1388 = vmatprep.mubr.msk.f32.mxu0 %vm1579_vm0, %v1580_v28  ;;  %v209_v5 = vpop.permute.xlu1 %208 }
  0xa6   :  { %v204_v7 = vpop.permute.xlu0 %203  ;;  %v274_v26 = vmul.f32 %v209_v5, %v126_v20 }
  0xa7   :  { %v1456_v8 = vpack.c.bf16 %v460_v3, %v459_v4  ;;  %v273_v27 = vmul.f32 %v204_v7, %v126_v20  ;;  %v84_v3 = vrot.slane %v56_v61, %v1844_v6  ;;  %v480_v4 = vld [vmem:[%s1999_s3 + $0x6] sm:$0x3] }
  0xa9   :  { %1457 = vmatpush3.bf16.msra.mxu1 %v1456_v8  ;;  %v357_v16 = vpop.permute.xlu1 %356 }
  0xaa   :  { %v352_v17 = vpop.permute.xlu0 %351  ;;  %1464 = vmatprep.subr.bf16.mxu1 %v1578_v11  ;;  %v438_v18 = vadd.f32 %v357_v16, %v270_v10 }
  0xab   :  { %v437_v19 = vadd.f32 %v352_v17, %v269_v12  ;;  %v134_v12 = vrot.slane %v84_v3, %v1865_v14 }
  0xac   :  { %1378 = vmatmul.mubr.msk.f32.vlgmr.msra.gmra.mrb[0].mxu1 %vm483_vm1, %v478_v15  ;;  %v462_v21 = vmax.f32 %v438_v18, 0.0 }
  0xad   :  { %v461_v23 = vmax.f32 %v437_v19, 0.0  ;;  %1399 = vmatprep.mubr.msk.f32.mxu1 %vm1579_vm0, %v1580_v28  ;;  %v199_v22 = vpop.permute.xlu1 %198 }
  0xae   :  { %v194_v24 = vpop.permute.xlu0 %193  ;;  %v272_v38 = vmul.f32 %v199_v22, %v122_v2 }
  0xaf   :  { %v1459_v25 = vpack.c.bf16 %v462_v21, %v461_v23  ;;  %v271_v39 = vmul.f32 %v194_v24, %v122_v2 }
  0xb1   :  { %1460 = vmatpush3.bf16.msra.mxu0 %v1459_v25  ;;  %v377_v29 = vpop.permute.xlu1 %376 }
  0xb2   :  { %v372_v30 = vpop.permute.xlu0 %371  ;;  %1461 = vmatprep.subr.bf16.mxu0 %v1578_v11  ;;  %v442_v31 = vadd.f32 %v377_v29, %v274_v26 }
  0xb3   :  { %v441_v32 = vadd.f32 %v372_v30, %v273_v27 }
  0xb4   :  { %v466_v33 = vmax.f32 %v442_v31, 0.0 }
  0xb5   :  { %v465_v34 = vmax.f32 %v441_v32, 0.0  ;;  %v219_v35 = vpop.permute.xlu1 %218 }
  0xb6   :  { %v214_v36 = vpop.permute.xlu0 %213  ;;  %v276_v51 = vmul.f32 %v219_v35, %v126_v20 }
  0xb7   :  { %v1465_v37 = vpack.c.bf16 %v466_v33, %v465_v34  ;;  %v275_v52 = vmul.f32 %v214_v36, %v126_v20 }
  0xb9   :  { %1466 = vmatpush3.bf16.msra.mxu1 %v1465_v37  ;;  %v367_v41 = vpop.permute.xlu1 %366 }
  0xba   :  { %v362_v42 = vpop.permute.xlu0 %361  ;;  %1467 = vmatprep.subr.bf16.mxu1 %v1578_v11  ;;  %v440_v43 = vadd.f32 %v367_v41, %v272_v38 }
  0xbb   :  { %v439_v44 = vadd.f32 %v362_v42, %v271_v39 }
  0xbc   :  { %v464_v45 = vmax.f32 %v440_v43, 0.0 }
  0xbd   :  { %v463_v46 = vmax.f32 %v439_v44, 0.0  ;;  %v229_v48 = vpop.permute.xlu1 %228 }
  0xbe   :  { %v224_v49 = vpop.permute.xlu0 %223  ;;  %v278_v1 = vmul.f32 %v229_v48, %v130_v58  ;;  %v481_v48 = vld [vmem:[%s1999_s3 + $0x8] sm:$0x3] }
  0xbf   :  { %v1462_v50 = vpack.c.bf16 %v464_v45, %v463_v46  ;;  %v277_v2 = vmul.f32 %v224_v49, %v130_v58 }
  0xc1   :  { %1463 = vmatpush3.bf16.msra.mxu0 %v1462_v50  ;;  %v387_v54 = vpop.permute.xlu1 %386  ;;  %v482_v50 = vld [vmem:[%s1999_s3 + $0xa] sm:$0x3] }
  0xc2   :  { %v382_v55 = vpop.permute.xlu0 %381  ;;  %1470 = vmatprep.subr.bf16.mxu0 %v1578_v11  ;;  %v444_v56 = vadd.f32 %v387_v54, %v276_v51 }
  0xc3   :  { %v443_v57 = vadd.f32 %v382_v55, %v275_v52 }
  0xc4   :  { %1389 = vmatmul.mubr.msk.f32.vlgmr.msra.gmra.mrb[2].mxu0 %vm483_vm1, %v479_v9  ;;  %v468_v59 = vmax.f32 %v444_v56, 0.0 }
  0xc5   :  { %v467_v60 = vmax.f32 %v443_v57, 0.0  ;;  %1410 = vmatprep.mubr.msk.f32.mxu0 %vm1579_vm0, %v1580_v28  ;;  %v249_v62 = vpop.permute.xlu1 %248 }
  0xc6   :  { %v244_v63 = vpop.permute.xlu0 %243  ;;  %v282_v19 = vmul.f32 %v249_v62, %v134_v12 }
  0xc7   :  { %v1468_v0 = vpack.c.bf16 %v468_v59, %v467_v60  ;;  %v281_v20 = vmul.f32 %v244_v63, %v134_v12 }
  0xc9   :  { %1469 = vmatpush3.bf16.msra.mxu1 %v1468_v0  ;;  %v397_v5 = vpop.permute.xlu1 %396 }
  0xca   :  { %v392_v7 = vpop.permute.xlu0 %391  ;;  %1476 = vmatprep.subr.bf16.mxu1 %v1578_v11  ;;  %v446_v8 = vadd.f32 %v397_v5, %v278_v1 }
  0xcb   :  { %v445_v10 = vadd.f32 %v392_v7, %v277_v2 }
  0xcc   :  { %1400 = vmatmul.mubr.msk.f32.vlgmr.msra.gmra.mrb[2].mxu1 %vm483_vm1, %v480_v4  ;;  %v470_v13 = vmax.f32 %v446_v8, 0.0 }
  0xcd   :  { %v469_v15 = vmax.f32 %v445_v10, 0.0  ;;  %1421 = vmatprep.mubr.msk.f32.mxu1 %vm1579_vm0, %v1580_v28  ;;  %v239_v16 = vpop.permute.xlu1 %238 }
  0xce   :  { %v234_v17 = vpop.permute.xlu0 %233  ;;  %v280_v31 = vmul.f32 %v239_v16, %v130_v58 }
  0xcf   :  { %v1471_v18 = vpack.c.bf16 %v470_v13, %v469_v15  ;;  %v279_v32 = vmul.f32 %v234_v17, %v130_v58 }
  0xd1   :  { %1472 = vmatpush3.bf16.msra.mxu0 %v1471_v18  ;;  %v417_v21 = vpop.permute.xlu1 %416 }
  0xd2   :  { %v412_v23 = vpop.permute.xlu0 %411  ;;  %1473 = vmatprep.subr.bf16.mxu0 %v1578_v11  ;;  %v450_v22 = vadd.f32 %v417_v21, %v282_v19 }
  0xd3   :  { %v449_v24 = vadd.f32 %v412_v23, %v281_v20 }
  0xd4   :  { %v474_v25 = vmax.f32 %v450_v22, 0.0 }
  0xd5   :  { %v473_v26 = vmax.f32 %v449_v24, 0.0  ;;  %v259_v27 = vpop.permute.xlu1 %258 }
  0xd6   :  { %v254_v29 = vpop.permute.xlu0 %253  ;;  %v284_v37 = vmul.f32 %v259_v27, %v134_v12 }
  0xd7   :  { %v1477_v30 = vpack.c.bf16 %v474_v25, %v473_v26  ;;  %v283_v38 = vmul.f32 %v254_v29, %v134_v12 }
  0xd9   :  { %1478 = vmatpush3.bf16.msra.mxu1 %v1477_v30  ;;  %v407_v33 = vpop.permute.xlu1 %406 }
  0xda   :  { %v402_v34 = vpop.permute.xlu0 %401  ;;  %1479 = vmatprep.subr.bf16.mxu1 %v1578_v11  ;;  %v448_v35 = vadd.f32 %v407_v33, %v280_v31 }
  0xdb   :  { %v447_v36 = vadd.f32 %v402_v34, %v279_v32 }
  0xdc   :  { %v472_v39 = vmax.f32 %v448_v35, 0.0 }
  0xdd   :  { %v471_v40 = vmax.f32 %v447_v36, 0.0  ;;  %v427_v41 = vpop.permute.xlu1 %426 }
  0xde   :  { %v422_v42 = vpop.permute.xlu0 %421  ;;  %v452_v44 = vadd.f32 %v427_v41, %v284_v37 }
  0xdf   :  { %v1474_v43 = vpack.c.bf16 %v472_v39, %v471_v40  ;;  %v451_v45 = vadd.f32 %v422_v42, %v283_v38 }
  0xe0   :  { %v476_v46 = vmax.f32 %v452_v44, 0.0 }
  0xe1   :  { %v475_v47 = vmax.f32 %v451_v45, 0.0  ;;  %1475 = vmatpush3.bf16.msra.mxu0 %v1474_v43  ;;  %v992_v0 = vpop.permute.xlu1 %991 }
  0xe2   :  { %1482 = vmatprep.subr.bf16.mxu0 %v1578_v11  ;;  %v944_v61 = vpop.permute.xlu0 %943 }
  0xe3   :  { %v1480_v49 = vpack.c.bf16 %v476_v46, %v475_v47 }
  0xe4   :  { %1411 = vmatmul.mubr.msk.f32.vlgmr.msra.gmra.mrb[4].mxu0 %vm483_vm1, %v481_v48 }
  0xe5   :  { %1481 = vmatpush3.bf16.msra.mxu1 %v1480_v49  ;;  %1432 = vmatprep.mubr.msk.f32.mxu0 %vm1579_vm0, %v1580_v28  ;;  %v1012_v3 = vpop.permute.xlu1 %1011 }
  0xe6   :  { %1488 = vmatprep.subr.bf16.mxu1 %v1578_v11  ;;  %v997_v1 = vpop.permute.xlu0 %996 }
  0xe8   :  { %1422 = vmatmul.mubr.msk.f32.vlgmr.msra.gmra.mrb[4].mxu1 %vm483_vm1, %v482_v50 }
  0xe9   :  { %1443 = vmatprep.mubr.msk.f32.mxu1 %vm1579_vm0, %v1580_v28  ;;  %v1048_v5 = vpop.permute.xlu1 %1047 }
  0xea   :  { %v1017_v4 = vpop.permute.xlu0 %1016 }
  0xed   :  { %v1068_v8 = vpop.permute.xlu1 %1067 }
  0xee   :  { %v1053_v7 = vpop.permute.xlu0 %1052 }
  0xf1   :  { %v1002_v16 = vpop.permute.xlu1 %1001 }
  0xf2   :  { %v1073_v10 = vpop.permute.xlu0 %1072 }
  0xf5   :  { %v1022_v22 = vpop.permute.xlu1 %1021 }
  0xf6   :  { %v1007_v17 = vpop.permute.xlu0 %1006 }
  0xf9   :  { %v1058_v30 = vpop.permute.xlu1 %1057 }
  0xfa   :  { %v1027_v24 = vpop.permute.xlu0 %1026 }
  0xfd   :  { %v1078_v47 = vpop.permute.xlu1 %1077 }
  0xfe   :  { %v1063_v31 = vpop.permute.xlu0 %1062 }
 0x102   :  { %v1083_v48 = vpop.permute.xlu0 %1082 }
 0x177   :  { %v553_v51 = vpop.f32.mrb[0].mxu0 }
 0x178   :  { %922 = vst [vmem:[#allocation6] sm:$0x3] %v553_v51  ;;  %v1368_v52 = vpop.f32.mrb[1].mxu0  ;;  %v929_v53 = vsel %vm928_vm2, %v553_v51, 0.0 }
 0x17f   :  { %v626_v9 = vpop.f32.mrb[0].mxu1 }
 0x180   :  { %923 = vst [vmem:[#allocation6 + $0x2] sm:$0x3] %v626_v9  ;;  %v930_v54 = vsel %vm928_vm2, %v626_v9, 0.0  ;;  %v1379_v55 = vpop.f32.mrb[1].mxu1 }
 0x181   :  { %v931_v56 = vadd.f32 %v930_v54, %v929_v53 }
 0x197   :  { %v699_v57 = vpop.f32.mrb[2].mxu0 }
 0x198   :  { %924 = vst [vmem:[#allocation6 + $0x4] sm:$0x3] %v699_v57  ;;  %v932_v58 = vsel %vm928_vm2, %v699_v57, 0.0  ;;  %v1390_v59 = vpop.f32.mrb[3].mxu0 }
 0x199   :  { %v933_v60 = vadd.f32 %v932_v58, %v931_v56 }
 0x19f   :  { %v772_v28 = vpop.f32.mrb[2].mxu1 }
 0x1a0   :  { %925 = vst [vmem:[#allocation6 + $0x6] sm:$0x3] %v772_v28  ;;  %v934_v62 = vsel %vm928_vm2, %v772_v28, 0.0  ;;  %v1401_v63 = vpop.f32.mrb[3].mxu1  ;;  %v1101_v28 = vld [vmem:[%s2003_s7] sm:$0x7] }
 0x1a1   :  { %v935_v2 = vadd.f32 %v934_v62, %v933_v60  ;;  %v1102_v62 = vld [vmem:[%s2003_s7 + $0x4] sm:$0x7] }
 0x1b7   :  { %v845_v12 = vpop.f32.mrb[4].mxu0 }
 0x1b8   :  { %926 = vst [vmem:[#allocation6 + $0x8] sm:$0x3] %v845_v12  ;;  %v936_v13 = vsel %vm928_vm2, %v845_v12, 0.0  ;;  %v1412_v15 = vpop.f32.mrb[5].mxu0 }
 0x1b9   :  { %v937_v18 = vadd.f32 %v936_v13, %v935_v2 }
 0x1bb   :  { %v918_v19 = vpop.f32.mrb[4].mxu1 }
 0x1bc   :  { %927 = vst [vmem:[#allocation6 + $0xa] sm:$0x3] %v918_v19  ;;  %v938_v20 = vsel %vm928_vm2, %v918_v19, 0.0  ;;  %v1423_v21 = vpop.f32.mrb[5].mxu1 }
 0x1bd   :  { %v939_v23 = vadd.f32 %v938_v20, %v937_v18 }
 0x1bf   :  { %v946_v25 = vadd.f32 %v944_v61, %v939_v23 }
 0x1c1   :  { %v955_v26 = vrot.slane %v946_v25, %v1844_v6  ;;  %947 = vst [vmem:[#allocation4] sm:$0x3] %v946_v25 }
 0x1c3   :  { %v956_v27 = vcombine.high %v955_v26, %v955_v26  ;;  %v963_v29 = vrot.slane %v955_v26, %v1844_v6 }
 0x1c5   :  { %v970_v32 = vrot.slane %v956_v27, %v1844_v6  ;;  %v982_v33 = vrot.slane %v963_v29, %v1865_v14 }
 0x1c7   :  { %v986_v34 = vrot.slane %v970_v32, %v1865_v14  ;;  %v1029_v35 = vmul.f32 %v992_v0, %v982_v33  ;;  %v1030_v36 = vmul.f32 %v997_v1, %v982_v33  ;;  %v1031_v37 = vmul.f32 %v1002_v16, %v982_v33 }
 0x1c8   :  { %v1032_v38 = vmul.f32 %v1007_v17, %v982_v33 }
 0x1c9   :  { %v1085_v39 = vadd.f32 %v1048_v5, %v1029_v35  ;;  %v1086_v40 = vadd.f32 %v1053_v7, %v1030_v36  ;;  %v1033_v41 = vmul.f32 %v1012_v3, %v986_v34  ;;  %v1034_v42 = vmul.f32 %v1017_v4, %v986_v34 }
 0x1ca   :  { %v1087_v43 = vadd.f32 %v1058_v30, %v1031_v37  ;;  %v1088_v44 = vadd.f32 %v1063_v31, %v1032_v38  ;;  %v1035_v45 = vmul.f32 %v1022_v22, %v986_v34  ;;  %v1036_v46 = vmul.f32 %v1027_v24, %v986_v34 }
 0x1cb   :  { %v1093_v49 = vmax.f32 %v1085_v39, 0.0  ;;  %v1094_v6 = vmax.f32 %v1086_v40, 0.0  ;;  %v1089_v50 = vadd.f32 %v1068_v8, %v1033_v41  ;;  %v1090_v51 = vadd.f32 %v1073_v10, %v1034_v42 }
 0x1cc   :  { %v1095_v52 = vmax.f32 %v1087_v43, 0.0  ;;  %v1091_v14 = vadd.f32 %v1078_v47, %v1035_v45  ;;  %v1092_v53 = vadd.f32 %v1083_v48, %v1036_v46  ;;  %v1096_v56 = vmax.f32 %v1088_v44, 0.0 }
 0x1cd   :  { %v1483_v9 = vpack.c.bf16 %v1094_v6, %v1093_v49  ;;  %v1097_v54 = vmax.f32 %v1089_v50, 0.0  ;;  %v1098_v55 = vmax.f32 %v1090_v51, 0.0 }
 0x1ce   :  { %v1099_v58 = vmax.f32 %v1091_v14, 0.0  ;;  %v1100_v59 = vmax.f32 %v1092_v53, 0.0  ;;  %v1486_v60 = vpack.c.bf16 %v1096_v56, %v1095_v52 }
 0x1cf   :  { %1484 = vmatpush3.bf16.msra.mxu0 %v1483_v9  ;;  %v1489_v57 = vpack.c.bf16 %v1098_v55, %v1097_v54 }
 0x1d0   :  { %1485 = vmatprep.subr.bf16.mxu0 %v1578_v11  ;;  %v1492_v61 = vpack.c.bf16 %v1100_v59, %v1099_v58 }
 0x1d1   :  { %1490 = vmatpush3.bf16.msra.mxu1 %v1489_v57 }
 0x1d2   :  { %1491 = vmatprep.subr.bf16.mxu1 %v1578_v11 }
 0x1d3   :  { %1487 = vmatpush3.bf16.msra.mxu0 %v1486_v60 }
 0x1d5   :  { %1493 = vmatpush3.bf16.msra.mxu1 %v1492_v61 }
 0x1d6   :  { %1433 = vmatmul.mubr.msk.f32.vlgmr.msra.gmra.mrb[6].mxu0 %vm483_vm1, %v1101_v28 }
 0x1d8   :  { %1444 = vmatmul.mubr.msk.f32.vlgmr.msra.gmra.mrb[6].mxu1 %vm483_vm1, %v1102_v62 }
 0x1d9   :  { %1518 = shalt.err (!%p1515_p4)
}
 0x1da   :  { %s1519_s4 = scalar_lea.hbm %s2006_s10, 32 }
 0x1db   :  { %p1520_p5 = scmp.ne.s32.totalorder %s2006_s10, %s1519_s4  ;;  %p1523_p6 = scmp.lt.u32.totalorder %s1519_s4, %s2006_s10 }
 0x1dd   :  { %p1525_p7 = pnand %p1523_p6, %p1520_p5 }
 0x1df   :  { %1528 = shalt.err (!%p1525_p7)
}
 0x1e0   :  { %1282 = dma.vmem_to_hbm [thread:$0]  %s1280_s2, 32, %s2006_s10, [#allocation5]  }
 0x1e1   :  { %s1583_s6 = smov [#allocation6]  }
 0x1e2   :  { %s1288_s8 = sshll.u32 %s1583_s6, 4  ;;  %s1289_s8 = int_to_ptr.vmem [resolvable:$true] %s1288_s8 }
 0x1e3   :  { %s1529_s22 = scalar_lea.vmem %s1289_s8, 192  ;;  %p1534_p9 = scmp.lt.s32.totalorder %s1289_s8, %s1289_s8 }
 0x1e4   :  { %p1530_p8 = scmp.ne.s32.totalorder %s1289_s8, %s1529_s22  ;;  %p1535_p10 = scmp.lt.s32.totalorder %s1529_s22, %s1529_s22 }
 0x1e6   :  { %p1536_p11 = por %p1535_p10, %p1534_p9 }
 0x1e8   :  { %p1537_p12 = pnand %p1536_p11, %p1530_p8 }
 0x1ea   :  { %1540 = shalt.err (!%p1537_p12)
}
 0x1eb   :  { %s1541_s25 = scalar_lea.hbm %s2007_s11, 192 }
 0x1ec   :  { %p1542_p13 = scmp.ne.s32.totalorder %s2007_s11, %s1541_s25  ;;  %p1545_p0 = scmp.lt.u32.totalorder %s1541_s25, %s2007_s11 }
 0x1ee   :  { %p1547_p1 = pnand %p1545_p0, %p1542_p13 }
 0x1f0   :  { %1550 = shalt.err (!%p1547_p1)
}
 0x1f1   :  { %s1584_s28 = smov 32   ;;  %s1585_s29 = smov 2   ;;  %vm1251_vm3 = vcmask 1042432   ;;  %v1259_v5 = vpop.permute.xlu1 %1258 }
 0x1f2   :  { %1294 = dma.vmem_to_hbm [thread:$0]  %s1289_s8, 192, %s2007_s11, [#allocation5], %s1584_s28, %s1584_s28, %s1585_s29  }
 0x1f3   :  { %s1586_s16 = smov [#allocation2]  }
 0x1f4   :  { %s1269_s17 = sshll.u32 %s1586_s16, 4  ;;  %s1270_s17 = int_to_ptr.vmem [resolvable:$true] %s1269_s17 }
 0x1f5   :  { %s1551_s11 = scalar_lea.vmem %s1270_s17, 64  ;;  %p1556_p3 = scmp.lt.s32.totalorder %s1270_s17, %s1270_s17 }
 0x1f6   :  { %p1552_p2 = scmp.ne.s32.totalorder %s1270_s17, %s1551_s11  ;;  %p1557_p4 = scmp.lt.s32.totalorder %s1551_s11, %s1551_s11 }
 0x1f8   :  { %p1558_p5 = por %p1557_p4, %p1556_p3 }
 0x1fa   :  { %p1559_p6 = pnand %p1558_p5, %p1552_p2 }
 0x2a9   :  { %v1172_v11 = vpop.f32.mrb[6].mxu0 }
 0x2aa   :  { %1249 = vst [vmem:[%s2008_s12] sm:$0x7] %v1172_v11  ;;  %v1252_v63 = vsel %vm1251_vm3, %v1172_v11, 0.0  ;;  %v1434_v0 = vpop.f32.mrb[7].mxu0 }
 0x2ab   :  { %v1245_v1 = vpop.f32.mrb[6].mxu1 }
 0x2ac   :  { %1250 = vst [vmem:[%s2008_s12 + $0x4] sm:$0x7] %v1245_v1  ;;  %v1253_v2 = vsel %vm1251_vm3, %v1245_v1, 0.0  ;;  %v1445_v3 = vpop.f32.mrb[7].mxu1 }
 0x2ad   :  { %v1254_v4 = vadd.f32 %v1253_v2, %v1252_v63 }
 0x2af   :  { %v1261_v7 = vadd.f32 %v1259_v5, %v1254_v4 }
 0x2b1   :  { %1262 = vst [vmem:[#allocation2] sm:$0x7] %v1261_v7 }
 0x2b2   :  { %1562 = shalt.err (!%p1559_p6)
}
 0x2b3   :  { %s1563_s12 = scalar_lea.hbm %s2005_s9, 64 }
 0x2b4   :  { %p1564_p7 = scmp.ne.s32.totalorder %s2005_s9, %s1563_s12  ;;  %p1567_p8 = scmp.lt.u32.totalorder %s1563_s12, %s2005_s9 }
 0x2b6   :  { %p1569_p9 = pnand %p1567_p8, %p1564_p7 }
 0x2b8   :  { %1572 = shalt.err (!%p1569_p9)
}
 0x2b9   :  { %1272 = dma.vmem_to_hbm [thread:$0]  %s1270_s17, 64, %s2005_s9, [#allocation3]  }
 0x2ba   :  { %1573 = dma.done.wait [#allocation3], 64  }
 0x2bb   :  { %1574 = vsyncadd [#allocation3], 4294967232 }
 0x2bc   :  { %1575 = dma.done.wait [#allocation5], 224  }
 0x2bd   :  { %1576 = vsyncadd [#allocation5], 4294967072 }
 0x2be   :  { %1308 = vsyncpa [#allocation3], 1 }
 0x2bf   :  { %1309 = vsyncpa [#allocation5], 1 }

</bundles_post_ra>
